<compile_context>
chip_gen: v6e
topology: v6e:2x2x1
jax: 0.10.0
libtpu: 0.0.40
codegen_flags: <defaults>
</compile_context>

<pallas_src>
import math
import functools

import numpy as np
import jax
import jax.numpy as jnp
from jax import lax
from jax.experimental import pallas as pl
from jax.experimental.pallas import tpu as pltpu


# --------------------------------------------------------------------------
# One-off probe: pin down pltpu.roll's rotation convention so the per-tap
# static shifts are provably in the right direction on this jax/libtpu build.
# --------------------------------------------------------------------------
_ROLL_IS_JNP_CONVENTION = None


def _roll_is_jnp_convention():
    """True iff pltpu.roll(x, s)[..., i] == x[..., (i - s) % n] (jnp.roll)."""
    global _ROLL_IS_JNP_CONVENTION
    if _ROLL_IS_JNP_CONVENTION is None:
        def _probe(x_ref, o_ref):
            o_ref[...] = pltpu.roll(x_ref[...], shift=1, axis=1)

        x = jnp.broadcast_to(jnp.arange(128, dtype=jnp.float32)[None, :],
                             (8, 128))
        y = pl.pallas_call(
            _probe, out_shape=jax.ShapeDtypeStruct((8, 128), jnp.float32))(x)
        v = float(y[0, 0])
        if v == 127.0:
            _ROLL_IS_JNP_CONVENTION = True
        elif v == 1.0:
            _ROLL_IS_JNP_CONVENTION = False
        else:
            raise RuntimeError(f"unexpected pltpu.roll semantics (probe={v})")
    return _ROLL_IS_JNP_CONVENTION


def _pick_groups_per_block(g2, c2, min_ch=8):
    """Smallest divisor of g2 whose channel block covers >= min_ch channels."""
    for d in range(1, g2 + 1):
        if g2 % d == 0 and d * c2 >= min_ch:
            return d
    return g2


# --------------------------------------------------------------------------
# Kernel: one (batch, group-block) step, fully lane-dense.
#   x_ref  : (1, 1, Kb, Lpad) bf16   input channels of this group block
#   rc_ref : (2, Lpad)        int32  [row_idx; col_idx] per lane
#   dww_ref: (1, k*k, Kb, 1)  f32    depthwise taps (leading-axis per tap)
#   pww_ref: (1, Mb, Kb)      bf16   pointwise weight (block-diag inside block)
#   pwb_ref: (1, Mb, 1)       f32    pointwise bias with depthwise bias folded
#   o_ref  : (1, 1, Mb, Lout) f32
# --------------------------------------------------------------------------
def _dsgc_kernel(x_ref, rc_ref, dww_ref, pww_ref, pwb_ref, o_ref, *,
                 taps, stride, Hg, Wg, Ho, Wo, identity):
    xf = x_ref[0, 0].astype(jnp.float32)           # (Kb, Lpad), upcast once
    row = rc_ref[0:1, :]                           # (1, Lpad) int32
    col = rc_ref[1:2, :]                           # (1, Lpad) int32

    # ---- depthwise kxk conv: roll (XLU) + masked multiply-accumulate (VPU) --
    acc = None
    for (t, shift, r_lo, r_hi, c_lo, c_hi) in taps:
        sh = xf if shift == 0 else pltpu.roll(xf, shift=shift, axis=1)
        conds = []
        if r_lo is not None:
            conds.append(row >= r_lo)
        if r_hi is not None:
            conds.append(row < r_hi)
        if c_lo is not None:
            conds.append(col >= c_lo)
        if c_hi is not None:
            conds.append(col < c_hi)
        if conds:                                   # boundary taps only
            valid = conds[0]
            for cnd in conds[1:]:
                valid = jnp.logical_and(valid, cnd)
            sh = sh * valid.astype(jnp.float32)     # (1,Lpad) sublane-bcast
        w = dww_ref[0, t]                           # (Kb, 1) lane-broadcast
        contrib = sh * w
        acc = contrib if acc is None else acc + contrib

    # Keep only real output positions (identity for stride-1 'same' convs).
    if not identity:
        # TODO(synk): strided/cropped configs still pay an in-kernel relayout;
        #             emit stride-granular output tiles via the out index_map.
        kb = acc.shape[0]
        acc = acc.reshape(kb, Hg, Wg)
        acc = acc[:, 0:(Ho - 1) * stride + 1:stride,
                     0:(Wo - 1) * stride + 1:stride]
        acc = acc.reshape(kb, Ho * Wo)

    # ---- grouped 1x1 pointwise conv: one bf16 MXU matmul per group block ----
    y = jnp.dot(pww_ref[0], acc.astype(jnp.bfloat16),
                preferred_element_type=jnp.float32)  # (Mb, Lout) f32
    o_ref[0, 0] = y + pwb_ref[0]                     # folded bias in the store


class DepthwiseSeparableGroupConv:
    """JAX/Pallas port of the PyTorch module (deterministic synthetic params)."""

    def __init__(self, in_channels, out_channels, kernel_size, n, g1,
                 stride=1, padding=0, key=None):
        self.n = n
        self.g1 = g1 + n % g1
        self.g2 = math.gcd(self.g1, out_channels)
        self.middle_channel = out_channels // self.g2
        self.k = kernel_size
        self.stride = stride
        self.padding = padding
        self.C = in_channels * n                    # channels after concat
        assert self.C % self.g1 == 0 and self.C % self.g2 == 0
        self.c1 = self.C // self.g1
        self.c2 = self.C // self.g2
        self.Cout = self.g2 * self.middle_channel

        key = jax.random.PRNGKey(0) if key is None else key
        k1, k2, k3, k4 = jax.random.split(key, 4)
        # g1 depthwise convs (groups == channels) -> one (k,k) filter + bias / channel.
        self.dw_w = 0.1 * jax.random.normal(k1, (self.C, self.k, self.k), jnp.float32)
        self.dw_b = 0.1 * jax.random.normal(k2, (self.C,), jnp.float32)
        # g2 pointwise 1x1 convs, each maps c2 -> middle_channel.
        self.pw_w = 0.1 * jax.random.normal(
            k3, (self.g2, self.middle_channel, self.c2), jnp.float32)
        self.pw_b = 0.1 * jax.random.normal(
            k4, (self.g2, self.middle_channel), jnp.float32)

        # ---- kernel-ready parameter layouts (built once) --------------------
        # Group blocking: each grid step covers gpb pointwise groups so the
        # per-step channel count Kb is sublane-full (>= 8) even for tiny c2.
        self.gpb = _pick_groups_per_block(self.g2, self.c2)
        self.nb = self.g2 // self.gpb
        self.Kb = self.gpb * self.c2
        self.Mb = self.gpb * self.middle_channel

        # Depthwise taps as (nb, k*k, Kb, 1): static leading-axis read per tap.
        kk = self.k * self.k
        dw = self.dw_w.reshape(self.nb, self.Kb, kk)
        self.dw_w_taps = jnp.transpose(dw, (0, 2, 1))[..., None]       # f32

        # Pointwise weight per group block (block-diagonal inside a block only
        # when gpb > 1; dense per-group when c2 >= 8).
        wblk = np.zeros((self.nb, self.Mb, self.Kb), np.float32)
        pw_np = np.asarray(self.pw_w)
        for b in range(self.nb):
            for j in range(self.gpb):
                g = b * self.gpb + j
                wblk[b,
                     j * self.middle_channel:(j + 1) * self.middle_channel,
                     j * self.c2:(j + 1) * self.c2] = pw_np[g]
        self.pw_w_blk = jnp.asarray(wblk).astype(jnp.bfloat16)

        # Depthwise bias folded into the pointwise bias (exact in f32).
        dw_b_g = self.dw_b.reshape(self.g2, self.c2)
        pw_b_eff = self.pw_b + jnp.einsum('gmc,gc->gm', self.pw_w, dw_b_g)
        self.pw_b_eff = pw_b_eff.reshape(self.nb, self.Mb, 1)          # f32

    def __call__(self, xs):
        x = jnp.concatenate(xs, axis=1)             # (B, C, H, W)
        B, C, H, W = x.shape
        assert C == self.C
        p, s, k = self.padding, self.stride, self.k
        Ho = (H + 2 * p - k) // s + 1
        Wo = (W + 2 * p - k) // s + 1
        assert Ho >= 1 and Wo >= 1

        # Working grid the kernel accumulates on (== input grid for standard
        # p <= (k-1)/2 convs; over-padded configs get zero rows/cols appended).
        Hg = max(H, (Ho - 1) * s + 1)
        Wg = max(W, (Wo - 1) * s + 1)
        if (Hg, Wg) != (H, W):
            x = jnp.pad(x, ((0, 0), (0, 0), (0, Hg - H), (0, Wg - W)))
        Lg = Hg * Wg
        Lo = Ho * Wo
        identity = (s == 1 and Ho == Hg and Wo == Wg)

        # Lane-dense slabs: pad the flattened spatial axis to a multiple of
        # 128 on the fast path so loads/rolls/stores are unmasked.
        Lpad = ((Lg + 127) // 128) * 128 if identity else Lg
        Lout = Lpad if identity else Lo

        x_flat = x.reshape(B, C, Lg)                # metadata-only reshape
        if Lpad != Lg:
            x_flat = jnp.pad(x_flat, ((0, 0), (0, 0), (0, Lpad - Lg)))
        x_k = x_flat.reshape(B, self.nb, self.Kb, Lpad).astype(jnp.bfloat16)

        # Tiny row/col lane-index table (replaces the old (k*k, Lg) f32 masks).
        jj = np.arange(Lpad)
        rows = np.where(jj < Lg, jj // Wg, Hg).astype(np.int32)
        cols = np.where(jj < Lg, jj % Wg, Wg).astype(np.int32)
        rc = jnp.asarray(np.stack([rows, cols], axis=0))    # (2, Lpad) int32

        # Static per-tap plan: roll shift + only the boundary checks that can
        # actually fail (the centre tap needs none at all).
        jnp_conv = _roll_is_jnp_convention()
        taps = []
        for kh in range(k):
            for kw in range(k):
                t = kh * k + kw
                off = (kh - p) * Wg + (kw - p)
                shift = 0 if off == 0 else ((-off if jnp_conv else off) % Lpad)
                taps.append((t, shift,
                             (p - kh) if kh < p else None,
                             (Hg + p - kh) if kh > p else None,
                             (p - kw) if kw < p else None,
                             (Wg + p - kw) if kw > p else None))
        taps = tuple(taps)

        kernel = functools.partial(
            _dsgc_kernel, taps=taps, stride=s, Hg=Hg, Wg=Wg, Ho=Ho, Wo=Wo,
            identity=identity)

        out = pl.pallas_call(
            kernel,
            out_shape=jax.ShapeDtypeStruct((B, self.nb, self.Mb, Lout),
                                           jnp.float32),
            grid=(B, self.nb),
            in_specs=[
                pl.BlockSpec((1, 1, self.Kb, Lpad), lambda b, gb: (b, gb, 0, 0)),
                pl.BlockSpec((2, Lpad), lambda b, gb: (0, 0)),
                pl.BlockSpec((1, self.k * self.k, self.Kb, 1),
                             lambda b, gb: (gb, 0, 0, 0)),
                pl.BlockSpec((1, self.Mb, self.Kb), lambda b, gb: (gb, 0, 0)),
                pl.BlockSpec((1, self.Mb, 1), lambda b, gb: (gb, 0, 0)),
            ],
            out_specs=pl.BlockSpec((1, 1, self.Mb, Lout),
                                   lambda b, gb: (b, gb, 0, 0)),
            compiler_params=pltpu.CompilerParams(
                dimension_semantics=("parallel", "parallel"),
                vmem_limit_bytes=48 * 1024 * 1024),
        )(x_k, rc, self.dw_w_taps, self.pw_w_blk, self.pw_b_eff)

        if Lout != Lo:
            out = out[..., :Lo]                      # crop lane padding
        return out.reshape(B, self.Cout, Ho, Wo)

    # Pure-JAX f32 reference (independent of the kernel) for correctness check.
    def reference(self, xs):
        x = jnp.concatenate(xs, axis=1)
        C = x.shape[1]
        y = lax.conv_general_dilated(
            x, self.dw_w[:, None, :, :],             # (C, 1, k, k) OIHW
            window_strides=(self.stride, self.stride),
            padding=[(self.padding, self.padding)] * 2,
            dimension_numbers=('NCHW', 'OIHW', 'NCHW'),
            feature_group_count=C)
        y = y + self.dw_b[None, :, None, None]
        outs = []
        for g in range(self.g2):
            yg = y[:, g * self.c2:(g + 1) * self.c2]
            og = jnp.einsum('bchw,mc->bmhw', yg, self.pw_w[g])
            outs.append(og + self.pw_b[g][None, :, None, None])
        return jnp.concatenate(outs, axis=1)


if __name__ == "__main__":
    # Small deterministic config: in_channels=4, out_channels=8, k=3, n=2, g1=2
    B, in_ch, out_ch, k, n, g1 = 2, 4, 8, 3, 2, 2
    H = W = 16

    mod = DepthwiseSeparableGroupConv(in_ch, out_ch, kernel_size=k, n=n,
                                      g1=g1, stride=1, padding=1,
                                      key=jax.random.PRNGKey(0))

    key = jax.random.PRNGKey(0)
    xkeys = jax.random.split(key, n)
    xs = [jax.random.normal(xkeys[i], (B, in_ch, H, W), jnp.float32)
          for i in range(n)]

    out = jax.block_until_ready(mod(xs))
    ref = jax.block_until_ready(mod.reference(xs))
    assert out.shape == ref.shape == (B, out_ch, H, W), (out.shape, ref.shape)
    err = float(jnp.max(jnp.abs(out - ref)))
    # bf16 input + bf16 MXU operands with f32 accumulation -> relaxed tolerance.
    assert jnp.allclose(out, ref, rtol=1e-2, atol=1e-2), err

    print("KERNEL_OK")
</pallas_src>

<mosaic_0001>
module attributes {stable_mosaic.version = 11 : i64} {
  func.func @_probe(%arg0: memref<8x128xf32, #tpu.memory_space<vmem>>, %arg1: memref<8x128xf32, #tpu.memory_space<vmem>>) attributes {dimension_semantics = [], scalar_prefetch = 0 : i64, scratch_operands = 0 : i64, tpu.core_type = #tpu.core_type<tc>} {
    %c0 = arith.constant 0 : index
    %c0_0 = arith.constant 0 : index
    %0 = vector.load %arg0[%c0, %c0_0] : memref<8x128xf32, #tpu.memory_space<vmem>>, vector<8x128xf32>
    %c1_i32 = arith.constant 1 : i32
    %1 = tpu.dynamic_rotate %0 by %c1_i32 dim 1 : vector<8x128xf32>, i32 -> vector<8x128xf32>
    %c0_1 = arith.constant 0 : index
    %c0_2 = arith.constant 0 : index
    %2 = vector.load %arg1[%c0_1, %c0_2] : memref<8x128xf32, #tpu.memory_space<vmem>>, vector<8x128xf32>
    tpu.vector_store %arg1[%c0_1, %c0_2], %1 {strides = array<i32>} : memref<8x128xf32, #tpu.memory_space<vmem>>, vector<8x128xf32>,
    return
  }
}

</mosaic_0001>

<bundles_post_ra>
// kernel: tpu_custom_call.1
= control target key start
LH: loop header
LB: loop body
LE: loop exit
PB: predicated region body
PF: predicated region fallthrough
CT: control target
= control target key end

     0   :  { %6 = vsyncpa [#allocation3], 0  ;;  %s106_s0 = inlined_call_operand.hbm [shape: f32[8,128], index: 0, kind: input, shape index: {}]   ;;  %s107_s1 = inlined_call_operand.hbm [shape: f32[8,128], index: 1, kind: output, shape index: {}]  }
   0x1   :  { %7 = vsyncpa [#allocation4], 0  ;;  %s87_s6 = smov [#allocation2]  }
   0x2   :  { %s14_s7 = sshll.u32 %s87_s6, 4  ;;  %s15_s7 = int_to_ptr.vmem [resolvable:$true] %s14_s7 }
   0x3   :  { %s51_s8 = scalar_lea.vmem %s15_s7, 128  ;;  %p56_p1 = scmp.lt.s32.totalorder %s15_s7, %s15_s7 }
   0x4   :  { %p52_p0 = scmp.ne.s32.totalorder %s15_s7, %s51_s8  ;;  %p57_p2 = scmp.lt.s32.totalorder %s51_s8, %s51_s8 }
   0x6   :  { %p58_p3 = por %p57_p2, %p56_p1 }
   0x8   :  { %p59_p4 = pnand %p58_p3, %p52_p0 }
   0xa   :  { %62 = shalt.err (!%p59_p4)
}
   0xb   :  { %17 = dma.hbm_to_vmem [thread:$0]  %s106_s0, 128, %s15_s7, [#allocation3]  }
   0xc   :  { %83 = dma.done.wait [#allocation3], 128  }
   0xd   :  { %84 = vsyncadd [#allocation3], 4294967168  ;;  %v21_v0 = vld [vmem:[#allocation2] sm:$0xff]  ;;  %s88_s11 = smov 1   ;;  %s89_s12 = smov [#allocation5]  }
   0xe   :  { %22 = vrot.lane.b32.xlu0 %v21_v0, %s88_s11  ;;  %s31_s13 = sshll.u32 %s89_s12, 4  ;;  %s32_s13 = int_to_ptr.vmem [resolvable:$true] %s31_s13 }
   0xf   :  { %s63_s14 = scalar_lea.vmem %s32_s13, 128  ;;  %p68_p6 = scmp.lt.s32.totalorder %s32_s13, %s32_s13 }
  0x10   :  { %p64_p5 = scmp.ne.s32.totalorder %s32_s13, %s63_s14  ;;  %p69_p7 = scmp.lt.s32.totalorder %s63_s14, %s63_s14 }
  0x12   :  { %p70_p8 = por %p69_p7, %p68_p6 }
  0x14   :  { %p71_p9 = pnand %p70_p8, %p64_p5 }
  0x80   :  { %v23_v1 = vpop.permute.xlu0 %22 }
  0x81   :  { %24 = vst [vmem:[#allocation5] sm:$0xff] %v23_v1 }
  0x82   :  { %74 = shalt.err (!%p71_p9)
}
  0x83   :  { %34 = dma.vmem_to_hbm [thread:$0]  %s32_s13, 128, %s107_s1, [#allocation4]  }
  0x84   :  { %85 = dma.done.wait [#allocation4], 128  }
  0x85   :  { %86 = vsyncadd [#allocation4], 4294967168 }
  0x86   :  { %38 = vsyncpa [#allocation3], 1 }
  0x87   :  { %39 = vsyncpa [#allocation4], 1 }

</bundles_post_ra>
